<compile_context>
chip_gen: v7x
topology: tpu7x:2x2x1
jax: 0.10.0
libtpu: 0.0.40
codegen_flags: <defaults>
</compile_context>

<pallas_src>
import jax
import jax.numpy as jnp
from jax.experimental import pallas as pl
from jax.experimental.pallas import tpu as pltpu  # noqa: F401  (TPU backend)


# ---------------------------------------------------------------------------
# Fused Pallas kernel: both children of Named read the same x slab once.
# ---------------------------------------------------------------------------
def _fused_named_kernel(x_ref, w_ref, b_ref, proj_ref, act_ref):
    # x_ref:    (N*Cin,  HW) f32  -- sublane-dense (8, 256) slab of all images
    # w_ref:    (Cout,   Cin) f32 -- 1x1 conv weight, output-major
    # b_ref:    (Cout,   1)  f32
    # proj_ref: (N*Cout, HW) f32  -- "proj" child: 1x1 conv + bias
    # act_ref:  (N*Cin,  HW) f32  -- "act"  child: ReLU
    x = x_ref[...]                              # single (8, 256) aligned load
    act_ref[...] = jnp.maximum(x, 0.0)          # VPU; unmasked full-tile store

    w = w_ref[...]
    b = b_ref[...]                              # (Cout, 1) broadcasts over lanes
    cout, cin = w.shape
    n_imgs = proj_ref.shape[0] // cout          # static (trace-time) constant

    # Statically unrolled over the (tiny) batch: per-image MXU matmul, each
    # proj store is an (8, 256) sublane-aligned unmasked vst.
    for n in range(n_imgs):
        xn = x[n * cin:(n + 1) * cin, :]                            # (Cin, HW)
        proj_ref[n * cout:(n + 1) * cout, :] = (
            jnp.dot(w, xn, preferred_element_type=jnp.float32) + b  # (Cout, HW)
        )


def fused_proj_act(x_nchw, w_t, bias):
    """Compute both Named children in one single-step pallas_call.

    x_nchw: (N, Cin, H, W) f32
    w_t:    (Cout, Cin)    f32   (1x1 conv weight, output-major)
    bias:   (Cout,)        f32
    Returns (proj: (N, Cout, H, W), act: (N, Cin, H, W)).
    """
    N, Cin, H, W = x_nchw.shape
    Cout = w_t.shape[0]
    HW = H * W

    x2 = x_nchw.reshape(N * Cin, HW)       # free row-major view, (8, 256)
    b2 = bias.reshape(Cout, 1)

    itemsize = 4
    cost = pl.CostEstimate(
        flops=2 * N * Cout * Cin * HW,
        transcendentals=0,
        bytes_accessed=itemsize * (
            N * Cin * HW            # x read
            + Cout * Cin + Cout     # weights + bias read
            + N * Cout * HW         # proj write
            + N * Cin * HW          # act write
        ),
    )

    # No grid: one step, full arrays as single VMEM blocks (everything fits
    # trivially; total working set is ~32 KiB << any chip's VMEM).
    proj2, act2 = pl.pallas_call(
        _fused_named_kernel,
        out_shape=(
            jax.ShapeDtypeStruct((N * Cout, HW), jnp.float32),
            jax.ShapeDtypeStruct((N * Cin, HW), jnp.float32),
        ),
        cost_estimate=cost,
    )(x2, w_t, b2)

    return proj2.reshape(N, Cout, H, W), act2.reshape(N, Cin, H, W)


# ---------------------------------------------------------------------------
# Struct + Named (container semantics, same as the PyTorch module)
# ---------------------------------------------------------------------------
class Struct:
    """Minimal stand-in for the original Struct: dict -> attribute access."""

    def __init__(self, d):
        self._fields = dict(d)
        for k, v in d.items():
            setattr(self, k, v)

    def items(self):
        return self._fields.items()


class Named:
    """forward(x) -> Struct({name: child(x) for each named child}).

    A `fused_forward` callable may be supplied: it computes ALL children's
    outputs from a single fused pallas_call over the shared input (one HBM
    read of x, one launch) and must return a dict keyed by the child names.
    Semantics are identical to applying each child separately.
    """

    def __init__(self, fused_forward=None, **named):
        self._children = dict(named)
        self._fused = fused_forward

    def __call__(self, x):
        if self._fused is not None:
            out = dict(self._fused(x))
            assert set(out.keys()) == set(self._children.keys())
            return Struct(out)
        return Struct({k: fn(x) for k, fn in self._children.items()})


# ---------------------------------------------------------------------------
# Main
# ---------------------------------------------------------------------------
if __name__ == "__main__":
    key = jax.random.PRNGKey(0)
    k_x, k_w, k_b = jax.random.split(key, 3)

    N, Cin, H, W = 2, 4, 16, 16
    Cout = 8

    x = jax.random.normal(k_x, (N, Cin, H, W), dtype=jnp.float32)

    # Deterministic parameters for the "proj" child (1x1 conv, output-major).
    w_t = jax.random.normal(k_w, (Cout, Cin), dtype=jnp.float32) * 0.1
    b = jax.random.normal(k_b, (Cout,), dtype=jnp.float32) * 0.1

    # Fused fast path (single pallas_call); per-child fallbacks share the same
    # jitted fused computation (jit CSEs the duplicate call if both are used).
    fused = jax.jit(lambda t: fused_proj_act(t, w_t, b))
    model = Named(
        fused_forward=lambda t: dict(zip(("proj", "act"), fused(t))),
        proj=lambda t: fused(t)[0],
        act=lambda t: fused(t)[1],
    )

    out = model(x)
    jax.block_until_ready(out.proj)
    jax.block_until_ready(out.act)

    # Sanity checks against plain-JAX references.
    ref_proj = jnp.einsum("nchw,oc->nohw", x, w_t) + b[None, :, None, None]
    ref_act = jnp.maximum(x, 0.0)
    assert out.proj.shape == (N, Cout, H, W)
    assert out.act.shape == (N, Cin, H, W)
    assert jnp.allclose(out.proj, ref_proj, atol=1e-4, rtol=1e-4)
    assert jnp.allclose(out.act, ref_act)

    print("KERNEL_OK")
</pallas_src>

<mosaic_0001>
module attributes {stable_mosaic.version = 11 : i64} {
  func.func @_fused_named_kernel(%arg0: memref<8x256xf32, #tpu.memory_space<vmem>>, %arg1: memref<8x4xf32, #tpu.memory_space<vmem>>, %arg2: memref<8x1xf32, #tpu.memory_space<vmem>>, %arg3: memref<16x256xf32, #tpu.memory_space<vmem>>, %arg4: memref<8x256xf32, #tpu.memory_space<vmem>>) attributes {dimension_semantics = [], scalar_prefetch = 0 : i64, scratch_operands = 0 : i64, tpu.core_type = #tpu.core_type<tc>} {
    %c0 = arith.constant 0 : index
    %c0_0 = arith.constant 0 : index
    %0 = vector.load %arg0[%c0, %c0_0] : memref<8x256xf32, #tpu.memory_space<vmem>>, vector<8x256xf32>
    %cst = arith.constant 0.000000e+00 : f32
    %1 = vector.broadcast %cst : f32 to vector<8x256xf32>
    %2 = arith.maximumf %0, %1 : vector<8x256xf32>
    %c0_1 = arith.constant 0 : index
    %c0_2 = arith.constant 0 : index
    %3 = vector.load %arg4[%c0_1, %c0_2] : memref<8x256xf32, #tpu.memory_space<vmem>>, vector<8x256xf32>
    tpu.vector_store %arg4[%c0_1, %c0_2], %2 {strides = array<i32>} : memref<8x256xf32, #tpu.memory_space<vmem>>, vector<8x256xf32>,
    %c0_3 = arith.constant 0 : index
    %c0_4 = arith.constant 0 : index
    %4 = vector.load %arg1[%c0_3, %c0_4] : memref<8x4xf32, #tpu.memory_space<vmem>>, vector<8x4xf32>
    %c0_5 = arith.constant 0 : index
    %c0_6 = arith.constant 0 : index
    %5 = vector.load %arg2[%c0_5, %c0_6] : memref<8x1xf32, #tpu.memory_space<vmem>>, vector<8x1xf32>
    %6 = vector.extract_strided_slice %0 {offsets = [0, 0], sizes = [4, 256], strides = [1, 1]} : vector<8x256xf32> to vector<4x256xf32>
    %cst_7 = arith.constant dense<0.000000e+00> : vector<8x256xf32>
    %7 = tpu.matmul %4, %6, %cst_7 {dimension_numbers = #tpu.dot_dimension_numbers<[1], [0], [0], [1], [0, 0, 1, 1], [], []>} : vector<8x4xf32>, vector<4x256xf32>, vector<8x256xf32> -> vector<8x256xf32>
    %8 = vector.broadcast %5 : vector<8x1xf32> to vector<8x256xf32>
    %9 = arith.addf %7, %8 : vector<8x256xf32>
    %c0_8 = arith.constant 0 : index
    %c0_9 = arith.constant 0 : index
    %10 = vector.load %arg3[%c0_8, %c0_9] : memref<16x256xf32, #tpu.memory_space<vmem>>, vector<8x256xf32>
    tpu.vector_store %arg3[%c0_8, %c0_9], %9 {strides = array<i32>} : memref<16x256xf32, #tpu.memory_space<vmem>>, vector<8x256xf32>,
    %11 = vector.extract_strided_slice %0 {offsets = [4, 0], sizes = [4, 256], strides = [1, 1]} : vector<8x256xf32> to vector<4x256xf32>
    %cst_10 = arith.constant dense<0.000000e+00> : vector<8x256xf32>
    %12 = tpu.matmul %4, %11, %cst_10 {dimension_numbers = #tpu.dot_dimension_numbers<[1], [0], [0], [1], [0, 0, 1, 1], [], []>} : vector<8x4xf32>, vector<4x256xf32>, vector<8x256xf32> -> vector<8x256xf32>
    %13 = vector.broadcast %5 : vector<8x1xf32> to vector<8x256xf32>
    %14 = arith.addf %12, %13 : vector<8x256xf32>
    %c8 = arith.constant 8 : index
    %c0_11 = arith.constant 0 : index
    %15 = vector.load %arg3[%c8, %c0_11] : memref<16x256xf32, #tpu.memory_space<vmem>>, vector<8x256xf32>
    tpu.vector_store %arg3[%c8, %c0_11], %14 {strides = array<i32>} : memref<16x256xf32, #tpu.memory_space<vmem>>, vector<8x256xf32>,
    return
  }
}

</mosaic_0001>

<bundles_post_ra>
// kernel: _lambda_.1
= control target key start
LH: loop header
LB: loop body
LE: loop exit
PB: predicated region body
PF: predicated region fallthrough
CT: control target
= control target key end

     0   :  { %vm33_vm0 = vcmask 1043456   ;;  %v209_v2 = vmov 0.0   ;;  %vm29_vm1 = vcmask 31744   ;;  %v210_v8 = vmov 0   ;;  %s272_s0 = inlined_call_operand.vmem [shape: f32[8,256], index: 0, kind: input, shape index: {}]   ;;  %s273_s1 = inlined_call_operand.vmem [shape: f32[8,4], index: 1, kind: input, shape index: {}]   ;;  %s274_s2 = inlined_call_operand.vmem [shape: f32[8,1], index: 2, kind: input, shape index: {}]   ;;  %s275_s4 = inlined_call_operand.vmem [shape: f32[8,256], index: 4, kind: output, shape index: {1}]   ;;  %s276_s3 = inlined_call_operand.vmem [shape: f32[16,256], index: 3, kind: output, shape index: {0}]  }
   0x1   :  { %v17_v0 = vld [vmem:[%s272_s0 + $0x8] sm:$0xff]  ;;  %v16_v1 = vld [vmem:[%s272_s0] sm:$0xff]  ;;  %104 = vmatprep.mubr.f32.mxu0 %v209_v2  ;;  %183 = vmatprep.mubr.f32.mxu1 %v209_v2 }
   0x2   :  { %v22_v3 = vld [vmem:[%s273_s1] sm:$0xff]  ;;  %v19_v4 = vmax.f32 %v17_v0, 0.0  ;;  %200 = vmatprep.subr.msk.mxu0 %vm33_vm0, %v17_v0  ;;  %v18_v5 = vmax.f32 %v16_v1, 0.0  ;;  %v114_v6 = vrot.slane %v17_v0, 4  ;;  %v113_v7 = vrot.slane %v16_v1, 4  ;;  %208 = vset.pattern.permute.xlu0 %v210_v8 }
   0x3   :  { %v23_v9 = vld [vmem:[%s274_s2] sm:$0xff]  ;;  %201 = vmatpush1.msk.msra.mxu0 %vm33_vm0, %v16_v1 }
   0x4   :  { %26 = vperm.xlu0 %208, %v23_v9   ;;  %21 = vst [vmem:[%s275_s4 + $0x8] sm:$0xff] %v19_v4  ;;  %20 = vst [vmem:[%s275_s4] sm:$0xff] %v18_v5  ;;  %203 = vmatprep.subr.msk.mxu1 %vm33_vm0, %v114_v6 }
   0x5   :  { %202 = vmatmul.mubr.msk.f32.vlgmr.msra.gmra.mrb[0].mxu0 %vm29_vm1, %v22_v3  ;;  %204 = vmatpush1.msk.msra.mxu1 %vm33_vm0, %v113_v7 }
   0x6   :  { %205 = vmatmul.mubr.msk.f32.vlgmr.msra.gmra.mrb[0].mxu1 %vm29_vm1, %v22_v3 }
  0x83   :  { %v27_v10 = vpop.permute.xlu0 %26 }
  0xd8   :  { %v106_v11 = vpop.f32.mrb[0].mxu0 }
  0xd9   :  { %v107_v12 = vadd.f32 %v106_v11, %v27_v10  ;;  %v108_v13 = vpop.f32.mrb[1].mxu0  ;;  %v185_v15 = vpop.f32.mrb[0].mxu1 }
  0xda   :  { %v109_v14 = vadd.f32 %v108_v13, %v27_v10  ;;  %v186_v16 = vadd.f32 %v185_v15, %v27_v10  ;;  %v187_v17 = vpop.f32.mrb[1].mxu1 }
  0xdb   :  { %111 = vst [vmem:[%s276_s3] sm:$0xff] %v107_v12  ;;  %v188_v18 = vadd.f32 %v187_v17, %v27_v10 }
  0xdc   :  { %112 = vst [vmem:[%s276_s3 + $0x8] sm:$0xff] %v109_v14  ;;  %190 = vst [vmem:[%s276_s3 + $0x10] sm:$0xff] %v186_v16 }
  0xdd   :  { %191 = vst [vmem:[%s276_s3 + $0x18] sm:$0xff] %v188_v18 }

</bundles_post_ra>
